<compile_context>
chip_gen: v7x
topology: tpu7x:2x2x1
jax: 0.10.0
libtpu: 0.0.40
codegen_flags: <defaults>
</compile_context>

<pallas_src>
import functools
import math
from typing import NamedTuple, Optional

import jax
import jax.numpy as jnp
from jax.experimental import pallas as pl
from jax.experimental.pallas import tpu as pltpu

LANES = 128
_MIB = 1024 * 1024


def _sublane_multiple(dtype) -> int:
    return {4: 8, 2: 16, 1: 32}.get(jnp.dtype(dtype).itemsize, 8)


class _Plan(NamedTuple):
    n_total: int            # true element count (mean divisor)
    padded_rows: int        # rows of the (rows, 128) slab fed to the kernel
    tm: int                 # tile height (rows per block)
    n_tiles: int            # reduction tiles per core split
    num_splits: int         # leading grid axis (2 on v7x, else 1)
    chunk_rows: int         # in-kernel accumulation chunk
    n_chunks: int
    tail_rows: int
    vmem_limit_bytes: Optional[int]
    core_parallel: bool


class _DeviceCfg(NamedTuple):
    num_splits: int
    core_parallel: bool
    vmem_limit_bytes: Optional[int]
    block_cap_bytes: int


@functools.lru_cache(maxsize=None)
def _detect_device() -> _DeviceCfg:
    kind = ""
    try:
        devs = jax.devices()
        if devs:
            kind = (getattr(devs[0], "device_kind", "") or "")
    except Exception:
        pass
    kl = kind.lower()
    is_v7 = "7" in kl                       # e.g. "TPU7x"
    is_v5_v6 = ("v5" in kl) or ("v6" in kl)

    vmem_cap = None
    try:
        info = pltpu.get_tpu_info()
        vmem_cap = int(getattr(info, "vmem_capacity_bytes", 0)) or None
    except Exception:
        vmem_cap = None

    if vmem_cap:
        # 48 MiB on v7x (64 MiB VMEM/TC), 64 MiB on v5e/v6e (128 MiB VMEM).
        vmem_limit = min(64 * _MIB, (vmem_cap * 3) // 4)
    elif is_v7:
        vmem_limit = 48 * _MIB
    elif is_v5_v6:
        vmem_limit = 64 * _MIB
    else:
        vmem_limit = None                    # keep compiler default

    big_vmem = bool(vmem_cap and vmem_cap >= 64 * _MIB) or is_v7 or is_v5_v6
    block_cap = 4 * _MIB if big_vmem else 1 * _MIB

    core_parallel = is_v7 and hasattr(pltpu, "CORE_PARALLEL")
    num_splits = 2 if core_parallel else 1   # serial size-2 axis is useless on 1-TC chips
    return _DeviceCfg(num_splits, core_parallel, vmem_limit, block_cap)


@functools.lru_cache(maxsize=None)
def _plan_for(n_total: int, x_dtype_name: str, t_dtype_name: str,
              force_single_core: bool) -> _Plan:
    x_dt = jnp.dtype(x_dtype_name)
    t_dt = jnp.dtype(t_dtype_name)
    sub = max(_sublane_multiple(x_dt), _sublane_multiple(t_dt))
    itemsize = max(x_dt.itemsize, t_dt.itemsize)
    cfg = _detect_device()

    rows = pl.cdiv(n_total, LANES)
    tm_cap = max(sub, (cfg.block_cap_bytes // (LANES * itemsize) // sub) * sub)

    splits = 1 if force_single_core else cfg.num_splits
    if splits > 1 and rows < splits * 1024:
        splits = 1                           # too small to be worth a 2-core split
    core_parallel = cfg.core_parallel and splits > 1

    # 1) Preferred geometry: a tile height (multiple of the sublane packing)
    #    that divides the row count exactly -> zero padding, zero input copy.
    tm = None
    if rows % sub == 0 and rows >= splits * sub:
        tm_max = (min(tm_cap, rows // splits) // sub) * sub
        tm_min = max(sub, min(1024, tm_max))
        t = tm_max
        while t >= tm_min:
            if rows % (splits * t) == 0:
                tm = t
                break
            t -= sub

    if tm is not None:
        n_tiles = rows // (splits * tm)
        padded_rows = rows
    else:
        # 2) Fallback: near-equal big tiles, minimal zero padding.
        n_tiles = max(1, pl.cdiv(rows, splits * tm_cap))
        tm = max(sub, pl.cdiv(pl.cdiv(rows, splits * n_tiles), sub) * sub)
        padded_rows = splits * n_tiles * tm

    chunk_rows = max(sub, (min(tm, 512) // sub) * sub)
    n_chunks = tm // chunk_rows
    tail_rows = tm - n_chunks * chunk_rows

    return _Plan(n_total=n_total, padded_rows=padded_rows, tm=tm,
                 n_tiles=n_tiles, num_splits=splits, chunk_rows=chunk_rows,
                 n_chunks=n_chunks, tail_rows=tail_rows,
                 vmem_limit_bytes=cfg.vmem_limit_bytes,
                 core_parallel=core_parallel)


def _mse_partial_kernel(x_ref, t_ref, acc_ref, *, chunk_rows, n_chunks, tail_rows):
    """Accumulate the lane-wise sum of squared differences into acc_ref.

    acc_ref is the (8, 128) f32 output block for this core split; its output
    block index is constant across the inner (reduction) grid axis, so it
    stays resident in VMEM.  The tile is consumed in `chunk_rows`-row chunks
    so the f32 upcast / diff / square temporaries stay small even for
    multi-MiB input blocks.
    """
    @pl.when(pl.program_id(1) == 0)
    def _():
        acc_ref[...] = jnp.zeros_like(acc_ref)

    def accum(xc, tc):
        d = xc.astype(jnp.float32) - tc.astype(jnp.float32)
        sq = d * d
        # (rows, 128) -> (rows//8, 8, 128): pure sublane regrouping + VPU adds.
        acc_ref[...] += jnp.sum(sq.reshape(-1, 8, LANES), axis=0)

    if n_chunks == 1 and tail_rows == 0:
        accum(x_ref[...], t_ref[...])
    else:
        align = chunk_rows & -chunk_rows     # largest power of two dividing chunk_rows

        def body(c, carry):
            r0 = pl.multiple_of(c * chunk_rows, align)
            accum(x_ref[pl.ds(r0, chunk_rows), :], t_ref[pl.ds(r0, chunk_rows), :])
            return carry

        jax.lax.fori_loop(0, n_chunks, body, 0)

        if tail_rows > 0:
            r0 = n_chunks * chunk_rows       # static, sublane-aligned
            accum(x_ref[pl.ds(r0, tail_rows), :], t_ref[pl.ds(r0, tail_rows), :])


def _mse_sum_pallas(plan: _Plan, x_slab, t_slab):
    kernel = functools.partial(_mse_partial_kernel, chunk_rows=plan.chunk_rows,
                               n_chunks=plan.n_chunks, tail_rows=plan.tail_rows)
    n_tiles = plan.n_tiles
    in_idx = lambda c, i: (c * n_tiles + i, 0)

    if plan.core_parallel:
        dim_sem = (getattr(pltpu, "CORE_PARALLEL"),
                   getattr(pltpu, "ARBITRARY", "arbitrary"))
    else:
        dim_sem = ("arbitrary", "arbitrary")

    partials = pl.pallas_call(
        kernel,
        out_shape=jax.ShapeDtypeStruct((plan.num_splits, 8, LANES), jnp.float32),
        grid_spec=pltpu.PrefetchScalarGridSpec(
            num_scalar_prefetch=0,
            grid=(plan.num_splits, n_tiles),
            in_specs=[pl.BlockSpec((plan.tm, LANES), in_idx),
                      pl.BlockSpec((plan.tm, LANES), in_idx)],
            # Per-core-split partial accumulator; constant block index across
            # the inner (reduction) axis -> resident in VMEM.
            out_specs=pl.BlockSpec((None, 8, LANES), lambda c, i: (c, 0, 0)),
        ),
        compiler_params=pltpu.CompilerParams(
            dimension_semantics=dim_sem,
            vmem_limit_bytes=plan.vmem_limit_bytes,
        ),
    )(x_slab, t_slab)
    # Single cross-lane collapse of the (num_splits, 8, 128) partials here.
    return jnp.sum(partials)


def _to_slab(arr, plan: _Plan):
    flat = arr.reshape(-1)
    padded_n = plan.padded_rows * LANES
    if padded_n != flat.shape[0]:
        # Rare fallback path only; padded elements are zero in BOTH slabs, so
        # they contribute zero to the squared-diff sum.
        flat = jnp.pad(flat, (0, padded_n - flat.shape[0]))
    return flat.reshape(plan.padded_rows, LANES)


@functools.partial(jax.custom_vjp, nondiff_argnums=(0,))
def _mse_from_slabs(plan: _Plan, x_slab, t_slab):
    return _mse_sum_pallas(plan, x_slab, t_slab) / jnp.float32(plan.n_total)


def _mse_fwd(plan, x_slab, t_slab):
    return _mse_from_slabs(plan, x_slab, t_slab), (x_slab, t_slab)


def _mse_bwd(plan, res, g):
    # d(mse)/dx = 2*(x - t)/N ; padded elements have x == t == 0 -> zero grad.
    # TODO(synk): backward is plain (fused) XLA, not a Pallas kernel.
    x_slab, t_slab = res
    d = x_slab.astype(jnp.float32) - t_slab.astype(jnp.float32)
    gd = (2.0 / plan.n_total) * g * d
    return gd.astype(x_slab.dtype), (-gd).astype(t_slab.dtype)


_mse_from_slabs.defvjp(_mse_fwd, _mse_bwd)


@functools.partial(jax.jit, static_argnums=(0,))
def _forward_jit(plan: _Plan, x, t_slab):
    """Single jitted program: input slab layout + Pallas reduction + divide."""
    return _mse_from_slabs(plan, _to_slab(x, plan), t_slab)


def _run(plan, x, target, t_slab):
    try:
        return plan, t_slab, _forward_jit(plan, x, t_slab)
    except Exception:
        if plan.num_splits > 1 or plan.core_parallel:
            # Safety net: retry single-core if the CORE_PARALLEL compile fails.
            plan1 = _plan_for(plan.n_total, jnp.dtype(x.dtype).name,
                              jnp.dtype(target.dtype).name, True)
            t_slab1 = _to_slab(target, plan1)
            return plan1, t_slab1, _forward_jit(plan1, x, t_slab1)
        raise


def content_loss_forward(x, target):
    """Functional form of ContentLoss.forward: returns (input, mse_loss)."""
    assert x.shape == target.shape, "input and target must match (mse_loss)"
    plan = _plan_for(int(math.prod(x.shape)), jnp.dtype(x.dtype).name,
                     jnp.dtype(target.dtype).name, False)
    t_slab = _to_slab(target, plan)
    _, _, loss = _run(plan, x, target, t_slab)
    return x, loss


class ContentLossPallas:
    """Mirror of the PyTorch module: holds a detached target, stores .loss.

    The target's flattened/padded (rows, 128) slab is prepared once per input
    signature and cached, so repeated forward calls (style-transfer loop) do
    no layout work on the constant target.
    """

    def __init__(self, target):
        self.target = jax.lax.stop_gradient(target)   # "detach"
        self.loss = None
        self._cache = {}   # (shape, input dtype name) -> (plan, target slab)

    def __call__(self, x):
        assert x.shape == self.target.shape, "input and target must match"
        key = (tuple(x.shape), jnp.dtype(x.dtype).name)
        entry = self._cache.get(key)
        if entry is None:
            plan = _plan_for(int(math.prod(x.shape)), jnp.dtype(x.dtype).name,
                             jnp.dtype(self.target.dtype).name, False)
            entry = (plan, _to_slab(self.target, plan))
        plan, t_slab = entry
        plan, t_slab, loss = _run(plan, x, self.target, t_slab)
        self._cache[key] = (plan, t_slab)
        # TODO(synk): storing self.loss as an attribute only works eagerly;
        # under an enclosing jax.jit trace it would hold a tracer (same
        # side-effect pattern as the PyTorch module).
        self.loss = loss
        return x     # identity pass-through, exactly as the PyTorch module


if __name__ == "__main__":
    key = jax.random.PRNGKey(0)
    k1, k2, k3, k4, k5, k6 = jax.random.split(key, 6)

    # --- Case 1: small NCHW f32 conv-feature-like shape (aligned, no pad). ---
    B, C, H, W = 2, 4, 16, 16
    x = jax.random.normal(k1, (B, C, H, W), dtype=jnp.float32)
    target = jax.random.normal(k2, (B, C, H, W), dtype=jnp.float32)

    mod = ContentLossPallas(target)
    out = mod(x)
    loss = mod.loss
    jax.block_until_ready((out, loss))
    ref_loss = jnp.mean((x - target) ** 2)
    assert jnp.allclose(loss, ref_loss, rtol=1e-5, atol=1e-6), (loss, ref_loss)
    assert jnp.array_equal(out, x)

    # Second call reuses the cached plan + target slab.
    x_half = x * 0.5
    out2 = mod(x_half)
    jax.block_until_ready(mod.loss)
    ref2 = jnp.mean((x_half - target) ** 2)
    assert jnp.allclose(mod.loss, ref2, rtol=1e-5, atol=1e-6), (mod.loss, ref2)
    assert jnp.array_equal(out2, x_half)

    # Gradient of the loss w.r.t. the input (what style transfer needs).
    gx = jax.grad(lambda xx: content_loss_forward(xx, target)[1])(x)
    gref = 2.0 * (x - target) / x.size
    jax.block_until_ready(gx)
    assert jnp.allclose(gx, gref, rtol=1e-5, atol=1e-6)

    # --- Case 2: ragged bf16 shape (not a multiple of 128) -> exercises the
    #     zero-diff padding fallback and native-bf16 streaming. ---
    xb = jax.random.normal(k3, (1, 3, 13, 17), dtype=jnp.bfloat16)
    tb = jax.random.normal(k4, (1, 3, 13, 17), dtype=jnp.bfloat16)
    out_b, loss_b = content_loss_forward(xb, tb)
    jax.block_until_ready((out_b, loss_b))
    ref_b = jnp.mean((xb.astype(jnp.float32) - tb.astype(jnp.float32)) ** 2)
    assert jnp.allclose(loss_b, ref_b, rtol=1e-5, atol=1e-6), (loss_b, ref_b)
    assert jnp.array_equal(out_b, xb)

    # --- Case 3: larger feature map -> multi-tile grid, chunked in-kernel
    #     accumulation loop + tail chunk, zero-copy (divisor) tiling. ---
    x3 = jax.random.normal(k5, (2, 8, 72, 1000), dtype=jnp.float32)
    t3 = jax.random.normal(k6, (2, 8, 72, 1000), dtype=jnp.float32)
    out3, loss3 = content_loss_forward(x3, t3)
    jax.block_until_ready((out3, loss3))
    ref3 = jnp.mean((x3 - t3) ** 2)
    # Slightly looser tolerance: different (but both f32) accumulation orders.
    assert jnp.allclose(loss3, ref3, rtol=1e-4, atol=1e-6), (loss3, ref3)
    assert jnp.array_equal(out3, x3)

    print("KERNEL_OK")
</pallas_src>

<mosaic_0001>
module attributes {stable_mosaic.version = 11 : i64} {
  func.func @_mse_partial_kernel(%arg0: i32, %arg1: i32, %arg2: memref<16x128xf32, #tpu.memory_space<vmem>>, %arg3: memref<16x128xf32, #tpu.memory_space<vmem>>, %arg4: memref<1x8x128xf32, #tpu.memory_space<vmem>>) attributes {dimension_semantics = [#tpu.dimension_semantics<arbitrary>, #tpu.dimension_semantics<arbitrary>], iteration_bounds = array<i64: 1, 1>, scalar_prefetch = 0 : i64, scratch_operands = 0 : i64, tpu.core_type = #tpu.core_type<tc>, window_params = [{transform_indices = @transform_0, window_bounds = array<i64: 16, 128>}, {transform_indices = @transform_1, window_bounds = array<i64: 16, 128>}, {transform_indices = @transform_2, window_bounds = array<i64: 1, 8, 128>}]} {
    %c0_i32 = arith.constant 0 : i32
    %0 = arith.cmpi eq, %arg1, %c0_i32 : i32
    %1 = arith.extui %0 : i1 to i32
    %c0_i32_0 = arith.constant 0 : i32
    %2 = arith.cmpi ne, %1, %c0_i32_0 : i32
    scf.if %2 {
      %cst_10 = arith.constant 0.000000e+00 : f32
      %15 = vector.broadcast %cst_10 : f32 to vector<8x128xf32>
      %c0_11 = arith.constant 0 : index
      %c0_12 = arith.constant 0 : index
      %c0_13 = arith.constant 0 : index
      %16 = vector.load %arg4[%c0_11, %c0_12, %c0_13] : memref<1x8x128xf32, #tpu.memory_space<vmem>>, vector<1x8x128xf32>
      %17 = vector.shape_cast %16 : vector<1x8x128xf32> to vector<8x128xf32>
      %18 = vector.shape_cast %15 : vector<8x128xf32> to vector<1x8x128xf32>
      tpu.vector_store %arg4[%c0_11, %c0_12, %c0_13], %18 {strides = array<i32>} : memref<1x8x128xf32, #tpu.memory_space<vmem>>, vector<1x8x128xf32>,
    } else {
    }
    %c0 = arith.constant 0 : index
    %c0_1 = arith.constant 0 : index
    %3 = vector.load %arg2[%c0, %c0_1] : memref<16x128xf32, #tpu.memory_space<vmem>>, vector<16x128xf32>
    %c0_2 = arith.constant 0 : index
    %c0_3 = arith.constant 0 : index
    %4 = vector.load %arg3[%c0_2, %c0_3] : memref<16x128xf32, #tpu.memory_space<vmem>>, vector<16x128xf32>
    %5 = arith.subf %3, %4 : vector<16x128xf32>
    %6 = arith.mulf %5, %5 : vector<16x128xf32>
    %c0_4 = arith.constant 0 : index
    %c0_5 = arith.constant 0 : index
    %c0_6 = arith.constant 0 : index
    %7 = vector.load %arg4[%c0_4, %c0_5, %c0_6] : memref<1x8x128xf32, #tpu.memory_space<vmem>>, vector<1x8x128xf32>
    %8 = vector.shape_cast %7 : vector<1x8x128xf32> to vector<8x128xf32>
    %9 = vector.shape_cast %6 : vector<16x128xf32> to vector<2x8x128xf32>
    %cst = arith.constant dense<0.000000e+00> : vector<8x128xf32>
    %10 = vector.multi_reduction <add>, %9, %cst [0] : vector<2x8x128xf32> to vector<8x128xf32>
    %11 = arith.addf %8, %10 : vector<8x128xf32>
    %c0_7 = arith.constant 0 : index
    %c0_8 = arith.constant 0 : index
    %c0_9 = arith.constant 0 : index
    %12 = vector.load %arg4[%c0_7, %c0_8, %c0_9] : memref<1x8x128xf32, #tpu.memory_space<vmem>>, vector<1x8x128xf32>
    %13 = vector.shape_cast %12 : vector<1x8x128xf32> to vector<8x128xf32>
    %14 = vector.shape_cast %11 : vector<8x128xf32> to vector<1x8x128xf32>
    tpu.vector_store %arg4[%c0_7, %c0_8, %c0_9], %14 {strides = array<i32>} : memref<1x8x128xf32, #tpu.memory_space<vmem>>, vector<1x8x128xf32>,
    return
  }
  func.func @transform_0(%arg0: i32, %arg1: i32) -> (i32, i32) {
    %c1_i32 = arith.constant 1 : i32
    %0 = arith.muli %arg0, %c1_i32 : i32
    %1 = arith.addi %0, %arg1 : i32
    %c0_i32 = arith.constant 0 : i32
    %c0_i32_0 = arith.constant 0 : i32
    return %1, %c0_i32 : i32, i32
  }
  func.func @transform_1(%arg0: i32, %arg1: i32) -> (i32, i32) {
    %c1_i32 = arith.constant 1 : i32
    %0 = arith.muli %arg0, %c1_i32 : i32
    %1 = arith.addi %0, %arg1 : i32
    %c0_i32 = arith.constant 0 : i32
    %c0_i32_0 = arith.constant 0 : i32
    return %1, %c0_i32 : i32, i32
  }
  func.func @transform_2(%arg0: i32, %arg1: i32) -> (i32, i32, i32) {
    %c0_i32 = arith.constant 0 : i32
    %c0_i32_0 = arith.constant 0 : i32
    %c0_i32_1 = arith.constant 0 : i32
    return %arg0, %c0_i32, %c0_i32_0 : i32, i32, i32
  }
}

</mosaic_0001>

<bundles_post_ra>
// kernel: _forward_jit.1
= control target key start
LH: loop header
LB: loop body
LE: loop exit
PB: predicated region body
PF: predicated region fallthrough
CT: control target
= control target key end

     0   :  { %s119_s0 = inlined_call_operand.vmem [shape: f32[16,128], index: 0, kind: input, shape index: {}]   ;;  %s120_s1 = inlined_call_operand.vmem [shape: f32[16,128], index: 1, kind: input, shape index: {}]   ;;  %s121_s2 = inlined_call_operand.vmem [shape: f32[1,8,128], index: 2, kind: output, shape index: {}]  }
   0x1   :  { %v60_v0 = vld [vmem:[%s119_s0] sm:$0xff]  ;;  %v61_v1 = vld [vmem:[%s119_s0 + $0x8] sm:$0xff] }
   0x2   :  { %v62_v2 = vld [vmem:[%s120_s1] sm:$0xff]  ;;  %v63_v3 = vld [vmem:[%s120_s1 + $0x8] sm:$0xff] }
   0x3   :  { %v64_v4 = vsub.f32 %v60_v0, %v62_v2  ;;  %v65_v5 = vsub.f32 %v61_v1, %v63_v3 }
   0x5   :  { %v66_v6 = vmul.f32 %v64_v4, %v64_v4  ;;  %v67_v7 = vmul.f32 %v65_v5, %v65_v5 }
   0x7   :  { %v69_v8 = vadd.f32 %v67_v7, %v66_v6 }
   0x9   :  { %71 = vst [vmem:[%s121_s2] sm:$0xff] %v69_v8 }

</bundles_post_ra>
